<compile_context>
chip_gen: v6e
topology: v6e:2x2x1
jax: 0.10.0
libtpu: 0.0.40
codegen_flags: <defaults>
</compile_context>

<pallas_src>
import jax
import jax.numpy as jnp
from jax.experimental import pallas as pl
from jax.experimental.pallas import tpu as pltpu

FEATURE_SIZE = 128               # F   (module hard-codes latent = 2)
LATENT = 2
F = FEATURE_SIZE
F8 = F // 8                      # 16

# ---- small-weight slab layout: (WS_ROWS, F) float32, all sections lane-offset 0 ----
R_W1C = 0                        # rows [0, 128)   : w1c (F,  F8)     cols [0, F8)
R_W21 = F                        # rows [128, 144) : w21 (F8, LATENT) cols [0, LATENT)
R_W22 = F + F8                   # rows [144, 160) : w22 (F8, LATENT) cols [0, LATENT)
R_W3 = F + 2 * F8                # rows [160, 168) : w3  (LATENT, F8) cols [0, F8)  (2 rows used)
R_W4A = F + 2 * F8 + 8           # rows [168, 184) : w4a (F8, F)
WS_ROWS = R_W4A + F8             # 184 (multiple of 8)

# ---- bias slab layout: (BS_ROWS, 4F) float32, one bias per row ----
BR_B1A, BR_B1B, BR_B1C, BR_B21, BR_B22, BR_B3, BR_B4A, BR_B4B, BR_B4C = range(9)
BS_ROWS = 16


def _elu(x):
    # nn.ELU(alpha=1.0); exp(x)-1 (not expm1) to guarantee Mosaic lowering.
    return jnp.where(x > 0, x, jnp.exp(x) - 1.0)


def vae_kernel(x_ref, eps_ref, w1a_ref, w1b_ref, w4b_ref, w4c_ref,
               ws_ref, bs_ref, recon_ref, mulv_ref):
    f32 = jnp.float32
    bf16 = jnp.bfloat16

    x = x_ref[...]                                                     # (B, F) f32

    # ---- encode: fc1 = Linear(F,4F) -> ELU -> Linear(4F,F) -> ELU -> Linear(F,F//8)
    h = jnp.dot(x.astype(bf16), w1a_ref[...], preferred_element_type=f32)
    h = _elu(h + bs_ref[BR_B1A:BR_B1A + 1, :])                         # (B, 4F)
    h = jnp.dot(h.astype(bf16), w1b_ref[...], preferred_element_type=f32)
    h = _elu(h + bs_ref[BR_B1B:BR_B1B + 1, 0:F])                       # (B, F)
    h = jnp.dot(h, ws_ref[R_W1C:R_W1C + F, 0:F8], preferred_element_type=f32)
    h1 = _elu(h + bs_ref[BR_B1C:BR_B1C + 1, 0:F8])                     # elu(fc1(x)), (B, F8)

    # ---- heads fc21 / fc22 (tiny f32 matmuls from the packed slab)
    mu = (jnp.dot(h1, ws_ref[R_W21:R_W21 + F8, 0:LATENT], preferred_element_type=f32)
          + bs_ref[BR_B21:BR_B21 + 1, 0:LATENT])                       # (B, LATENT)
    logvar = (jnp.dot(h1, ws_ref[R_W22:R_W22 + F8, 0:LATENT], preferred_element_type=f32)
              + bs_ref[BR_B22:BR_B22 + 1, 0:LATENT])                   # (B, LATENT)

    # ---- reparameterize: z = mu + eps * exp(0.5 * logvar)
    z = mu + eps_ref[...] * jnp.exp(0.5 * logvar)                      # (B, LATENT)

    # ---- decode: fc3 -> ELU, fc4 = Linear(F//8,F)->ELU->Linear(F,4F)->ELU->Linear(4F,F)
    h3 = jnp.dot(z, ws_ref[R_W3:R_W3 + LATENT, 0:F8], preferred_element_type=f32)
    h3 = _elu(h3 + bs_ref[BR_B3:BR_B3 + 1, 0:F8])                      # (B, F8)
    d = jnp.dot(h3, ws_ref[R_W4A:R_W4A + F8, :], preferred_element_type=f32)
    d = _elu(d + bs_ref[BR_B4A:BR_B4A + 1, 0:F])                       # (B, F)
    d = jnp.dot(d.astype(bf16), w4b_ref[...], preferred_element_type=f32)
    d = _elu(d + bs_ref[BR_B4B:BR_B4B + 1, :])                         # (B, 4F)
    d = jnp.dot(d.astype(bf16), w4c_ref[...], preferred_element_type=f32)
    d = d + bs_ref[BR_B4C:BR_B4C + 1, 0:F]                             # (B, F)

    # sigmoid: exp on EUP, approx reciprocal on EUP (avoids the VPU Newton divide)
    recon_ref[...] = pl.reciprocal(1.0 + jnp.exp(-d), approx=True)

    # single consolidated mu/logvar output buffer (one DMA instead of two tiny ones)
    mulv_ref[0, :, :] = mu
    mulv_ref[1, :, :] = logvar


def init_linear(key, fan_in, fan_out):
    """PyTorch-default-like deterministic init; weight stored as (in, out)."""
    kw, kb = jax.random.split(key)
    bound = 1.0 / jnp.sqrt(jnp.float32(fan_in))
    w = jax.random.uniform(kw, (fan_in, fan_out), jnp.float32, -bound, bound)
    b = jax.random.uniform(kb, (1, fan_out), jnp.float32, -bound, bound)
    return w, b


def init_params(key):
    keys = jax.random.split(key, 9)
    p = {}
    p["w1a"], p["b1a"] = init_linear(keys[0], F, F * 4)
    p["w1b"], p["b1b"] = init_linear(keys[1], F * 4, F)
    p["w1c"], p["b1c"] = init_linear(keys[2], F, F8)
    p["w21"], p["b21"] = init_linear(keys[3], F8, LATENT)
    p["w22"], p["b22"] = init_linear(keys[4], F8, LATENT)
    p["w3"], p["b3"] = init_linear(keys[5], LATENT, F8)
    p["w4a"], p["b4a"] = init_linear(keys[6], F8, F)
    p["w4b"], p["b4b"] = init_linear(keys[7], F, F * 4)
    p["w4c"], p["b4c"] = init_linear(keys[8], F * 4, F)
    return p


def pack_params(params):
    """One-time host-side packing: 18 param arrays -> 6 kernel inputs."""
    ws = jnp.zeros((WS_ROWS, F), jnp.float32)
    ws = ws.at[R_W1C:R_W1C + F, 0:F8].set(params["w1c"])
    ws = ws.at[R_W21:R_W21 + F8, 0:LATENT].set(params["w21"])
    ws = ws.at[R_W22:R_W22 + F8, 0:LATENT].set(params["w22"])
    ws = ws.at[R_W3:R_W3 + LATENT, 0:F8].set(params["w3"])
    ws = ws.at[R_W4A:R_W4A + F8, 0:F].set(params["w4a"])

    bs = jnp.zeros((BS_ROWS, 4 * F), jnp.float32)
    bs = bs.at[BR_B1A, :].set(params["b1a"][0])
    bs = bs.at[BR_B1B, 0:F].set(params["b1b"][0])
    bs = bs.at[BR_B1C, 0:F8].set(params["b1c"][0])
    bs = bs.at[BR_B21, 0:LATENT].set(params["b21"][0])
    bs = bs.at[BR_B22, 0:LATENT].set(params["b22"][0])
    bs = bs.at[BR_B3, 0:F8].set(params["b3"][0])
    bs = bs.at[BR_B4A, 0:F].set(params["b4a"][0])
    bs = bs.at[BR_B4B, :].set(params["b4b"][0])
    bs = bs.at[BR_B4C, 0:F].set(params["b4c"][0])

    return {
        "w1a": params["w1a"].astype(jnp.bfloat16),   # (F, 4F)   bf16 MXU operand
        "w1b": params["w1b"].astype(jnp.bfloat16),   # (4F, F)
        "w4b": params["w4b"].astype(jnp.bfloat16),   # (F, 4F)
        "w4c": params["w4c"].astype(jnp.bfloat16),   # (4F, F)
        "wsmall": ws,                                # (184, 128) f32 slab
        "bias": bs,                                  # (16, 512)  f32 slab
    }


@jax.jit
def vae_forward(x, eps, packed):
    # x.view(-1, feature_size)
    x2d = x.reshape(-1, F).astype(jnp.float32)
    B = x2d.shape[0]

    vmem = pl.BlockSpec(memory_space=pltpu.MemorySpace.VMEM)
    recon, mulv = pl.pallas_call(
        vae_kernel,
        out_shape=(
            jax.ShapeDtypeStruct((B, F), jnp.float32),
            jax.ShapeDtypeStruct((2, B, LATENT), jnp.float32),
        ),
        in_specs=[vmem] * 8,
        out_specs=(vmem, vmem),
        compiler_params=pltpu.CompilerParams(vmem_limit_bytes=8 * 1024 * 1024),
    )(x2d, eps, packed["w1a"], packed["w1b"], packed["w4b"], packed["w4c"],
      packed["wsmall"], packed["bias"])
    return recon, mulv[0], mulv[1]


def vae_forward_ref(x, eps, params):
    """Pure-JAX reference mirroring the kernel math (bf16 big-dot operands, f32 acc)."""
    x2d = x.reshape(-1, F).astype(jnp.float32)
    bf16 = jnp.bfloat16

    def bdot(a, w):
        return jnp.dot(a.astype(bf16), w.astype(bf16), preferred_element_type=jnp.float32)

    def fdot(a, w):
        return jnp.dot(a, w, preferred_element_type=jnp.float32,
                       precision=jax.lax.Precision.HIGHEST)

    h = _elu(bdot(x2d, params["w1a"]) + params["b1a"])
    h = _elu(bdot(h, params["w1b"]) + params["b1b"])
    h1 = _elu(fdot(h, params["w1c"]) + params["b1c"])
    mu = fdot(h1, params["w21"]) + params["b21"]
    logvar = fdot(h1, params["w22"]) + params["b22"]
    z = mu + eps * jnp.exp(0.5 * logvar)
    h3 = _elu(fdot(z, params["w3"]) + params["b3"])
    d = _elu(fdot(h3, params["w4a"]) + params["b4a"])
    d = _elu(bdot(d, params["w4b"]) + params["b4b"])
    d = bdot(d, params["w4c"]) + params["b4c"]
    return jax.nn.sigmoid(d), mu, logvar


if __name__ == "__main__":
    key = jax.random.PRNGKey(0)
    k_x, k_eps, k_par = jax.random.split(key, 3)

    x = jax.random.normal(k_x, (2, 4, F), jnp.float32)      # flattens to (8, F)
    B = 2 * 4
    # torch.randn_like(std) equivalent: Gaussian eps drawn deterministically outside.
    eps = jax.random.normal(k_eps, (B, LATENT), jnp.float32)

    params = init_params(k_par)
    packed = pack_params(params)                             # one-time packing

    recon, mu, logvar = vae_forward(x, eps, packed)
    jax.block_until_ready((recon, mu, logvar))

    # sanity check against pure-JAX reference (bf16 big weights + approx reciprocal
    # in the kernel -> loosened tolerance per review)
    r_ref, mu_ref, lv_ref = vae_forward_ref(x, eps, params)
    assert recon.shape == (B, F) and mu.shape == (B, LATENT) and logvar.shape == (B, LATENT)
    assert bool(jnp.isfinite(recon).all()) and bool(jnp.isfinite(mu).all())
    assert jnp.allclose(recon, r_ref, atol=2e-2, rtol=2e-2)
    assert jnp.allclose(mu, mu_ref, atol=2e-2, rtol=2e-2)
    assert jnp.allclose(logvar, lv_ref, atol=2e-2, rtol=2e-2)

    print("KERNEL_OK")
</pallas_src>

<mosaic_0001>
module attributes {stable_mosaic.version = 11 : i64} {
  func.func @vae_kernel(%arg0: memref<8x128xf32, #tpu.memory_space<vmem>>, %arg1: memref<8x2xf32, #tpu.memory_space<vmem>>, %arg2: memref<128x512xbf16, #tpu.memory_space<vmem>>, %arg3: memref<512x128xbf16, #tpu.memory_space<vmem>>, %arg4: memref<128x512xbf16, #tpu.memory_space<vmem>>, %arg5: memref<512x128xbf16, #tpu.memory_space<vmem>>, %arg6: memref<184x128xf32, #tpu.memory_space<vmem>>, %arg7: memref<16x512xf32, #tpu.memory_space<vmem>>, %arg8: memref<8x128xf32, #tpu.memory_space<vmem>>, %arg9: memref<2x8x2xf32, #tpu.memory_space<vmem>>) attributes {dimension_semantics = [], scalar_prefetch = 0 : i64, scratch_operands = 0 : i64, tpu.core_type = #tpu.core_type<tc>} {
    %c0 = arith.constant 0 : index
    %c0_0 = arith.constant 0 : index
    %0 = vector.load %arg0[%c0, %c0_0] : memref<8x128xf32, #tpu.memory_space<vmem>>, vector<8x128xf32>
    %1 = arith.truncf %0 : vector<8x128xf32> to vector<8x128xbf16>
    %c0_1 = arith.constant 0 : index
    %c0_2 = arith.constant 0 : index
    %2 = vector.load %arg2[%c0_1, %c0_2] : memref<128x512xbf16, #tpu.memory_space<vmem>>, vector<128x512xbf16>
    %cst = arith.constant dense<0.000000e+00> : vector<8x512xf32>
    %3 = tpu.matmul %1, %2, %cst {dimension_numbers = #tpu.dot_dimension_numbers<[1], [0], [0], [1], [0, 0, 1, 1], [], []>} : vector<8x128xbf16>, vector<128x512xbf16>, vector<8x512xf32> -> vector<8x512xf32>
    %c0_3 = arith.constant 0 : index
    %c0_4 = arith.constant 0 : index
    %4 = vector.load %arg7[%c0_3, %c0_4] : memref<16x512xf32, #tpu.memory_space<vmem>>, vector<1x512xf32>
    %5 = vector.broadcast %4 : vector<1x512xf32> to vector<8x512xf32>
    %6 = arith.addf %3, %5 : vector<8x512xf32>
    %cst_5 = arith.constant 0.000000e+00 : f32
    %7 = vector.broadcast %cst_5 : f32 to vector<8x512xf32>
    %8 = arith.cmpf ogt, %6, %7 : vector<8x512xf32>
    %9 = math.exp %6 : vector<8x512xf32>
    %cst_6 = arith.constant 1.000000e+00 : f32
    %10 = vector.broadcast %cst_6 : f32 to vector<8x512xf32>
    %11 = arith.subf %9, %10 : vector<8x512xf32>
    %12 = arith.select %8, %6, %11 : vector<8x512xi1>, vector<8x512xf32>
    %13 = arith.truncf %12 : vector<8x512xf32> to vector<8x512xbf16>
    %c0_7 = arith.constant 0 : index
    %c0_8 = arith.constant 0 : index
    %14 = vector.load %arg3[%c0_7, %c0_8] : memref<512x128xbf16, #tpu.memory_space<vmem>>, vector<512x128xbf16>
    %cst_9 = arith.constant dense<0.000000e+00> : vector<8x128xf32>
    %15 = tpu.matmul %13, %14, %cst_9 {dimension_numbers = #tpu.dot_dimension_numbers<[1], [0], [0], [1], [0, 0, 1, 1], [], []>} : vector<8x512xbf16>, vector<512x128xbf16>, vector<8x128xf32> -> vector<8x128xf32>
    %c1 = arith.constant 1 : index
    %c0_10 = arith.constant 0 : index
    %16 = vector.load %arg7[%c1, %c0_10] : memref<16x512xf32, #tpu.memory_space<vmem>>, vector<1x128xf32>
    %17 = vector.broadcast %16 : vector<1x128xf32> to vector<8x128xf32>
    %18 = arith.addf %15, %17 : vector<8x128xf32>
    %cst_11 = arith.constant 0.000000e+00 : f32
    %19 = vector.broadcast %cst_11 : f32 to vector<8x128xf32>
    %20 = arith.cmpf ogt, %18, %19 : vector<8x128xf32>
    %21 = math.exp %18 : vector<8x128xf32>
    %cst_12 = arith.constant 1.000000e+00 : f32
    %22 = vector.broadcast %cst_12 : f32 to vector<8x128xf32>
    %23 = arith.subf %21, %22 : vector<8x128xf32>
    %24 = arith.select %20, %18, %23 : vector<8x128xi1>, vector<8x128xf32>
    %c0_13 = arith.constant 0 : index
    %c0_14 = arith.constant 0 : index
    %25 = vector.load %arg6[%c0_13, %c0_14] : memref<184x128xf32, #tpu.memory_space<vmem>>, vector<128x16xf32>
    %cst_15 = arith.constant dense<0.000000e+00> : vector<8x16xf32>
    %26 = tpu.matmul %24, %25, %cst_15 {dimension_numbers = #tpu.dot_dimension_numbers<[1], [0], [0], [1], [0, 0, 1, 1], [], []>} : vector<8x128xf32>, vector<128x16xf32>, vector<8x16xf32> -> vector<8x16xf32>
    %c2 = arith.constant 2 : index
    %c0_16 = arith.constant 0 : index
    %27 = vector.load %arg7[%c2, %c0_16] : memref<16x512xf32, #tpu.memory_space<vmem>>, vector<1x16xf32>
    %28 = vector.broadcast %27 : vector<1x16xf32> to vector<8x16xf32>
    %29 = arith.addf %26, %28 : vector<8x16xf32>
    %cst_17 = arith.constant 0.000000e+00 : f32
    %30 = vector.broadcast %cst_17 : f32 to vector<8x16xf32>
    %31 = arith.cmpf ogt, %29, %30 : vector<8x16xf32>
    %32 = math.exp %29 : vector<8x16xf32>
    %cst_18 = arith.constant 1.000000e+00 : f32
    %33 = vector.broadcast %cst_18 : f32 to vector<8x16xf32>
    %34 = arith.subf %32, %33 : vector<8x16xf32>
    %35 = arith.select %31, %29, %34 : vector<8x16xi1>, vector<8x16xf32>
    %c128 = arith.constant 128 : index
    %c0_19 = arith.constant 0 : index
    %36 = vector.load %arg6[%c128, %c0_19] : memref<184x128xf32, #tpu.memory_space<vmem>>, vector<16x2xf32>
    %cst_20 = arith.constant dense<0.000000e+00> : vector<8x2xf32>
    %37 = tpu.matmul %35, %36, %cst_20 {dimension_numbers = #tpu.dot_dimension_numbers<[1], [0], [0], [1], [0, 0, 1, 1], [], []>} : vector<8x16xf32>, vector<16x2xf32>, vector<8x2xf32> -> vector<8x2xf32>
    %c3 = arith.constant 3 : index
    %c0_21 = arith.constant 0 : index
    %38 = vector.load %arg7[%c3, %c0_21] : memref<16x512xf32, #tpu.memory_space<vmem>>, vector<1x2xf32>
    %39 = vector.broadcast %38 : vector<1x2xf32> to vector<8x2xf32>
    %40 = arith.addf %37, %39 : vector<8x2xf32>
    %c144 = arith.constant 144 : index
    %c0_22 = arith.constant 0 : index
    %41 = vector.load %arg6[%c144, %c0_22] : memref<184x128xf32, #tpu.memory_space<vmem>>, vector<16x2xf32>
    %cst_23 = arith.constant dense<0.000000e+00> : vector<8x2xf32>
    %42 = tpu.matmul %35, %41, %cst_23 {dimension_numbers = #tpu.dot_dimension_numbers<[1], [0], [0], [1], [0, 0, 1, 1], [], []>} : vector<8x16xf32>, vector<16x2xf32>, vector<8x2xf32> -> vector<8x2xf32>
    %c4 = arith.constant 4 : index
    %c0_24 = arith.constant 0 : index
    %43 = vector.load %arg7[%c4, %c0_24] : memref<16x512xf32, #tpu.memory_space<vmem>>, vector<1x2xf32>
    %44 = vector.broadcast %43 : vector<1x2xf32> to vector<8x2xf32>
    %45 = arith.addf %42, %44 : vector<8x2xf32>
    %c0_25 = arith.constant 0 : index
    %c0_26 = arith.constant 0 : index
    %46 = vector.load %arg1[%c0_25, %c0_26] : memref<8x2xf32, #tpu.memory_space<vmem>>, vector<8x2xf32>
    %cst_27 = arith.constant 5.000000e-01 : f32
    %47 = vector.broadcast %cst_27 : f32 to vector<8x2xf32>
    %48 = arith.mulf %47, %45 : vector<8x2xf32>
    %49 = math.exp %48 : vector<8x2xf32>
    %50 = arith.mulf %46, %49 : vector<8x2xf32>
    %51 = arith.addf %40, %50 : vector<8x2xf32>
    %c160 = arith.constant 160 : index
    %c0_28 = arith.constant 0 : index
    %52 = vector.load %arg6[%c160, %c0_28] : memref<184x128xf32, #tpu.memory_space<vmem>>, vector<2x16xf32>
    %cst_29 = arith.constant dense<0.000000e+00> : vector<8x16xf32>
    %53 = tpu.matmul %51, %52, %cst_29 {dimension_numbers = #tpu.dot_dimension_numbers<[1], [0], [0], [1], [0, 0, 1, 1], [], []>} : vector<8x2xf32>, vector<2x16xf32>, vector<8x16xf32> -> vector<8x16xf32>
    %c5 = arith.constant 5 : index
    %c0_30 = arith.constant 0 : index
    %54 = vector.load %arg7[%c5, %c0_30] : memref<16x512xf32, #tpu.memory_space<vmem>>, vector<1x16xf32>
    %55 = vector.broadcast %54 : vector<1x16xf32> to vector<8x16xf32>
    %56 = arith.addf %53, %55 : vector<8x16xf32>
    %cst_31 = arith.constant 0.000000e+00 : f32
    %57 = vector.broadcast %cst_31 : f32 to vector<8x16xf32>
    %58 = arith.cmpf ogt, %56, %57 : vector<8x16xf32>
    %59 = math.exp %56 : vector<8x16xf32>
    %cst_32 = arith.constant 1.000000e+00 : f32
    %60 = vector.broadcast %cst_32 : f32 to vector<8x16xf32>
    %61 = arith.subf %59, %60 : vector<8x16xf32>
    %62 = arith.select %58, %56, %61 : vector<8x16xi1>, vector<8x16xf32>
    %c168 = arith.constant 168 : index
    %c0_33 = arith.constant 0 : index
    %63 = vector.load %arg6[%c168, %c0_33] : memref<184x128xf32, #tpu.memory_space<vmem>>, vector<16x128xf32>
    %cst_34 = arith.constant dense<0.000000e+00> : vector<8x128xf32>
    %64 = tpu.matmul %62, %63, %cst_34 {dimension_numbers = #tpu.dot_dimension_numbers<[1], [0], [0], [1], [0, 0, 1, 1], [], []>} : vector<8x16xf32>, vector<16x128xf32>, vector<8x128xf32> -> vector<8x128xf32>
    %c6 = arith.constant 6 : index
    %c0_35 = arith.constant 0 : index
    %65 = vector.load %arg7[%c6, %c0_35] : memref<16x512xf32, #tpu.memory_space<vmem>>, vector<1x128xf32>
    %66 = vector.broadcast %65 : vector<1x128xf32> to vector<8x128xf32>
    %67 = arith.addf %64, %66 : vector<8x128xf32>
    %cst_36 = arith.constant 0.000000e+00 : f32
    %68 = vector.broadcast %cst_36 : f32 to vector<8x128xf32>
    %69 = arith.cmpf ogt, %67, %68 : vector<8x128xf32>
    %70 = math.exp %67 : vector<8x128xf32>
    %cst_37 = arith.constant 1.000000e+00 : f32
    %71 = vector.broadcast %cst_37 : f32 to vector<8x128xf32>
    %72 = arith.subf %70, %71 : vector<8x128xf32>
    %73 = arith.select %69, %67, %72 : vector<8x128xi1>, vector<8x128xf32>
    %74 = arith.truncf %73 : vector<8x128xf32> to vector<8x128xbf16>
    %c0_38 = arith.constant 0 : index
    %c0_39 = arith.constant 0 : index
    %75 = vector.load %arg4[%c0_38, %c0_39] : memref<128x512xbf16, #tpu.memory_space<vmem>>, vector<128x512xbf16>
    %cst_40 = arith.constant dense<0.000000e+00> : vector<8x512xf32>
    %76 = tpu.matmul %74, %75, %cst_40 {dimension_numbers = #tpu.dot_dimension_numbers<[1], [0], [0], [1], [0, 0, 1, 1], [], []>} : vector<8x128xbf16>, vector<128x512xbf16>, vector<8x512xf32> -> vector<8x512xf32>
    %c7 = arith.constant 7 : index
    %c0_41 = arith.constant 0 : index
    %77 = vector.load %arg7[%c7, %c0_41] : memref<16x512xf32, #tpu.memory_space<vmem>>, vector<1x512xf32>
    %78 = vector.broadcast %77 : vector<1x512xf32> to vector<8x512xf32>
    %79 = arith.addf %76, %78 : vector<8x512xf32>
    %cst_42 = arith.constant 0.000000e+00 : f32
    %80 = vector.broadcast %cst_42 : f32 to vector<8x512xf32>
    %81 = arith.cmpf ogt, %79, %80 : vector<8x512xf32>
    %82 = math.exp %79 : vector<8x512xf32>
    %cst_43 = arith.constant 1.000000e+00 : f32
    %83 = vector.broadcast %cst_43 : f32 to vector<8x512xf32>
    %84 = arith.subf %82, %83 : vector<8x512xf32>
    %85 = arith.select %81, %79, %84 : vector<8x512xi1>, vector<8x512xf32>
    %86 = arith.truncf %85 : vector<8x512xf32> to vector<8x512xbf16>
    %c0_44 = arith.constant 0 : index
    %c0_45 = arith.constant 0 : index
    %87 = vector.load %arg5[%c0_44, %c0_45] : memref<512x128xbf16, #tpu.memory_space<vmem>>, vector<512x128xbf16>
    %cst_46 = arith.constant dense<0.000000e+00> : vector<8x128xf32>
    %88 = tpu.matmul %86, %87, %cst_46 {dimension_numbers = #tpu.dot_dimension_numbers<[1], [0], [0], [1], [0, 0, 1, 1], [], []>} : vector<8x512xbf16>, vector<512x128xbf16>, vector<8x128xf32> -> vector<8x128xf32>
    %c8 = arith.constant 8 : index
    %c0_47 = arith.constant 0 : index
    %89 = vector.load %arg7[%c8, %c0_47] : memref<16x512xf32, #tpu.memory_space<vmem>>, vector<1x128xf32>
    %90 = vector.broadcast %89 : vector<1x128xf32> to vector<8x128xf32>
    %91 = arith.addf %88, %90 : vector<8x128xf32>
    %cst_48 = arith.constant 0.000000e+00 : f32
    %92 = vector.broadcast %cst_48 : f32 to vector<8x128xf32>
    %93 = arith.subf %92, %91 : vector<8x128xf32>
    %94 = math.exp %93 : vector<8x128xf32>
    %cst_49 = arith.constant 1.000000e+00 : f32
    %95 = vector.broadcast %cst_49 : f32 to vector<8x128xf32>
    %96 = arith.addf %95, %94 : vector<8x128xf32>
    %97 = tpu.reciprocal %96 {approx = true} : vector<8x128xf32> -> vector<8x128xf32>
    %c0_50 = arith.constant 0 : index
    %c0_51 = arith.constant 0 : index
    %98 = vector.load %arg8[%c0_50, %c0_51] : memref<8x128xf32, #tpu.memory_space<vmem>>, vector<8x128xf32>
    tpu.vector_store %arg8[%c0_50, %c0_51], %97 {strides = array<i32>} : memref<8x128xf32, #tpu.memory_space<vmem>>, vector<8x128xf32>,
    %c0_52 = arith.constant 0 : index
    %c0_53 = arith.constant 0 : index
    %c0_54 = arith.constant 0 : index
    %99 = vector.load %arg9[%c0_52, %c0_53, %c0_54] : memref<2x8x2xf32, #tpu.memory_space<vmem>>, vector<1x8x2xf32>
    %100 = vector.shape_cast %99 : vector<1x8x2xf32> to vector<8x2xf32>
    %101 = vector.shape_cast %40 : vector<8x2xf32> to vector<1x8x2xf32>
    tpu.vector_store %arg9[%c0_52, %c0_53, %c0_54], %101 {strides = array<i32>} : memref<2x8x2xf32, #tpu.memory_space<vmem>>, vector<1x8x2xf32>,
    %c1_55 = arith.constant 1 : index
    %c0_56 = arith.constant 0 : index
    %c0_57 = arith.constant 0 : index
    %102 = vector.load %arg9[%c1_55, %c0_56, %c0_57] : memref<2x8x2xf32, #tpu.memory_space<vmem>>, vector<1x8x2xf32>
    %103 = vector.shape_cast %102 : vector<1x8x2xf32> to vector<8x2xf32>
    %104 = vector.shape_cast %45 : vector<8x2xf32> to vector<1x8x2xf32>
    tpu.vector_store %arg9[%c1_55, %c0_56, %c0_57], %104 {strides = array<i32>} : memref<2x8x2xf32, #tpu.memory_space<vmem>>, vector<1x8x2xf32>,
    return
  }
}

</mosaic_0001>

<bundles_post_ra>
// kernel: vae_forward.1
= control target key start
LH: loop header
LB: loop body
LE: loop exit
PB: predicated region body
PF: predicated region fallthrough
CT: control target
= control target key end

     0   :  { %15 = vsyncpa [#allocation3], 0  ;;  %s2730_s0 = inlined_call_operand.vmem [shape: f32[8,128], index: 0, kind: input, shape index: {}]   ;;  %s2731_s1 = inlined_call_operand.vmem [shape: f32[8,2], index: 1, kind: input, shape index: {}]   ;;  %s2732_s2 = inlined_call_operand.hbm [shape: bf16[128,512], index: 2, kind: input, shape index: {}]   ;;  %s2733_s3 = inlined_call_operand.hbm [shape: bf16[512,128], index: 3, kind: input, shape index: {}]   ;;  %s2734_s4 = inlined_call_operand.hbm [shape: bf16[128,512], index: 4, kind: input, shape index: {}]   ;;  %s2735_s5 = inlined_call_operand.hbm [shape: bf16[512,128], index: 5, kind: input, shape index: {}]   ;;  %s2736_s6 = inlined_call_operand.hbm [shape: f32[184,128], index: 6, kind: input, shape index: {}]   ;;  %s2737_s7 = inlined_call_operand.hbm [shape: f32[16,512], index: 7, kind: input, shape index: {}]   ;;  %s2738_s8 = inlined_call_operand.hbm [shape: f32[8,128], index: 8, kind: output, shape index: {0}]   ;;  %s2739_s9 = inlined_call_operand.vmem [shape: f32[2,8,2], index: 9, kind: output, shape index: {1}]  }
   0x1   :  { %16 = vsyncpa [#allocation6], 0 }
   0x2   :  { %17 = vsyncpa [#allocation9], 0 }
   0x3   :  { %18 = vsyncpa [#allocation12], 0 }
   0x4   :  { %19 = vsyncpa [#allocation4], 0  ;;  %s2564_s30 = smov [#allocation5]  }
   0x5   :  { %s41_s10 = sshll.u32 %s2564_s30, 4  ;;  %s42_s10 = int_to_ptr.vmem [resolvable:$true] %s41_s10 }
   0x6   :  { %s2422_s11 = scalar_lea.vmem %s42_s10, 4096  ;;  %p2427_p1 = scmp.lt.s32.totalorder %s42_s10, %s42_s10 }
   0x7   :  { %p2423_p0 = scmp.ne.s32.totalorder %s42_s10, %s2422_s11  ;;  %p2428_p2 = scmp.lt.s32.totalorder %s2422_s11, %s2422_s11 }
   0x9   :  { %p2429_p3 = por %p2428_p2, %p2427_p1 }
   0xb   :  { %p2430_p4 = pnand %p2429_p3, %p2423_p0 }
   0xd   :  { %2433 = shalt.err (!%p2430_p4)
}
   0xe   :  { %s2565_s12 = smov 64   ;;  %s2566_s13 = smov 4  }
   0xf   :  { %47 = dma.hbm_to_vmem [thread:$0]  %s2733_s3, 4096, %s42_s10, [#allocation6], %s2565_s12, %s2565_s12, %s2566_s13  }
  0x10   :  { %s2567_s16 = smov [#allocation8]   ;;  %s2568_s18 = smov [#allocation2]  }
  0x11   :  { %s65_s17 = sshll.u32 %s2567_s16, 4  ;;  %s29_s19 = sshll.u32 %s2568_s18, 4  ;;  %s66_s17 = int_to_ptr.vmem [resolvable:$true] %s65_s17  ;;  %s30_s19 = int_to_ptr.vmem [resolvable:$true] %s29_s19 }
  0x12   :  { %s2442_s20 = scalar_lea.vmem %s66_s17, 4096  ;;  %p2447_p6 = scmp.lt.s32.totalorder %s66_s17, %s66_s17 }
  0x13   :  { %p2443_p5 = scmp.ne.s32.totalorder %s66_s17, %s2442_s20  ;;  %p2448_p7 = scmp.lt.s32.totalorder %s2442_s20, %s2442_s20 }
  0x15   :  { %p2449_p8 = por %p2448_p7, %p2447_p6 }
  0x17   :  { %p2450_p9 = pnand %p2449_p8, %p2443_p5 }
  0x19   :  { %2453 = shalt.err (!%p2450_p9)
}
  0x1a   :  { %71 = dma.hbm_to_vmem [thread:$0]  %s2735_s5, 4096, %s66_s17, [#allocation9], %s2565_s12, %s2565_s12, %s2566_s13  }
  0x1b   :  { %s2462_s23 = scalar_lea.vmem %s30_s19, 4096  ;;  %p2467_p11 = scmp.lt.s32.totalorder %s30_s19, %s30_s19 }
  0x1c   :  { %p2463_p10 = scmp.ne.s32.totalorder %s30_s19, %s2462_s23  ;;  %p2468_p12 = scmp.lt.s32.totalorder %s2462_s23, %s2462_s23 }
  0x1e   :  { %p2469_p13 = por %p2468_p12, %p2467_p11 }
  0x20   :  { %p2470_p0 = pnand %p2469_p13, %p2463_p10 }
  0x22   :  { %2473 = shalt.err (!%p2470_p0)
}
  0x23   :  { %s2569_s3 = smov 256   ;;  %s2570_s24 = smov 16  }
  0x24   :  { %35 = dma.hbm_to_vmem [thread:$0]  %s2732_s2, 4096, %s30_s19, [#allocation3], %s2569_s3, %s2569_s3, %s2570_s24  }
  0x25   :  { %s2571_s27 = smov [#allocation7]   ;;  %s2572_s29 = smov [#allocation10]  }
  0x26   :  { %s53_s28 = sshll.u32 %s2571_s27, 4  ;;  %s77_s30 = sshll.u32 %s2572_s29, 4  ;;  %s54_s28 = int_to_ptr.vmem [resolvable:$true] %s53_s28  ;;  %s78_s30 = int_to_ptr.vmem [resolvable:$true] %s77_s30 }
  0x27   :  { %s2482_s5 = scalar_lea.vmem %s54_s28, 4096  ;;  %p2487_p2 = scmp.lt.s32.totalorder %s54_s28, %s54_s28 }
  0x28   :  { %p2483_p1 = scmp.ne.s32.totalorder %s54_s28, %s2482_s5  ;;  %p2488_p3 = scmp.lt.s32.totalorder %s2482_s5, %s2482_s5 }
  0x2a   :  { %p2489_p4 = por %p2488_p3, %p2487_p2 }
  0x2c   :  { %p2490_p5 = pnand %p2489_p4, %p2483_p1 }
  0x2e   :  { %2493 = shalt.err (!%p2490_p5)
}
  0x2f   :  { %59 = dma.hbm_to_vmem [thread:$0]  %s2734_s4, 4096, %s54_s28, [#allocation6], %s2569_s3, %s2569_s3, %s2570_s24  }
  0x30   :  { %s2502_s12 = scalar_lea.vmem %s78_s30, 2944  ;;  %p2507_p7 = scmp.lt.s32.totalorder %s78_s30, %s78_s30 }
  0x31   :  { %p2503_p6 = scmp.ne.s32.totalorder %s78_s30, %s2502_s12  ;;  %p2508_p8 = scmp.lt.s32.totalorder %s2502_s12, %s2502_s12 }
  0x33   :  { %p2509_p9 = por %p2508_p8, %p2507_p7 }
  0x35   :  { %p2510_p10 = pnand %p2509_p9, %p2503_p6 }
  0x37   :  { %2513 = shalt.err (!%p2510_p10)
}
  0x38   :  { %s2573_s2 = smov 128   ;;  %s2574_s13 = smov 8  }
  0x39   :  { %83 = dma.hbm_to_vmem [thread:$0]  %s2736_s6, 2944, %s78_s30, [#allocation9], %s2573_s2, %s2573_s2, %s2574_s13  }
  0x3a   :  { %s2575_s16 = smov [#allocation11]  }
  0x3b   :  { %s89_s17 = sshll.u32 %s2575_s16, 4  ;;  %s90_s17 = int_to_ptr.vmem [resolvable:$true] %s89_s17 }
  0x3c   :  { %s2522_s18 = scalar_lea.vmem %s90_s17, 1024  ;;  %p2527_p12 = scmp.lt.s32.totalorder %s90_s17, %s90_s17 }
  0x3d   :  { %p2523_p11 = scmp.ne.s32.totalorder %s90_s17, %s2522_s18  ;;  %p2528_p13 = scmp.lt.s32.totalorder %s2522_s18, %s2522_s18 }
  0x3f   :  { %p2529_p0 = por %p2528_p13, %p2527_p12 }
  0x41   :  { %p2530_p1 = pnand %p2529_p0, %p2523_p11 }
  0x43   :  { %2533 = shalt.err (!%p2530_p1)
}
  0x44   :  { %s2576_s4 = smov 512   ;;  %s2577_s19 = smov 32  }
  0x45   :  { %95 = dma.hbm_to_vmem [thread:$0]  %s2737_s7, 1024, %s90_s17, [#allocation12], %s2576_s4, %s2576_s4, %s2577_s19  }
  0x46   :  { %2554 = dma.done.wait [#allocation3], 4096  }
  0x47   :  { %2555 = vsyncadd [#allocation3], 4294963200 }
  0x48   :  { %2556 = dma.done.wait [#allocation6], 8192  }
  0x49   :  { %2557 = vsyncadd [#allocation6], 4294959104 }
  0x4a   :  { %2558 = dma.done.wait [#allocation9], 7040  }
  0x4b   :  { %2559 = vsyncadd [#allocation9], 4294960256 }
  0x4c   :  { %2560 = dma.done.wait [#allocation12], 1024  }
  0x4d   :  { %2561 = vsyncadd [#allocation12], 4294966272  ;;  %v2578_v0 = vmov 0   ;;  %v2224_v1 = vld [vmem:[#allocation2 + $0xe4] ss:$16 sps:$4 sm:$0xff]   ;;  %v2272_v34 = vld [vmem:[#allocation5 + $0x78] sm:$0xff]  }
  0x4e   :  { %363 = vmatprep.mubr.bf16.mxu0 %v2578_v0  ;;  %404 = vmatprep.mubr.bf16.mxu1 %v2578_v0  ;;  %v2226_v2 = vld [vmem:[#allocation2 + $0xec] ss:$16 sps:$4 sm:$0xff]   ;;  %v2228_v3 = vld [vmem:[#allocation2 + $0xe0] ss:$16 sps:$4 sm:$0xff]   ;;  %v2229_v4 = vld [vmem:[#allocation2 + $0xe8] ss:$16 sps:$4 sm:$0xff]  }
  0x4f   :  { %331 = vmatprep.subr.bf16.mxu0 %v2224_v1  ;;  %372 = vmatprep.subr.bf16.mxu1 %v2226_v2  ;;  %v2230_v5 = vld [vmem:[#allocation2 + $0xc4] ss:$16 sps:$4 sm:$0xff]   ;;  %v2232_v6 = vld [vmem:[#allocation2 + $0xcc] ss:$16 sps:$4 sm:$0xff]   ;;  %v2234_v7 = vld [vmem:[#allocation2 + $0xc0] ss:$16 sps:$4 sm:$0xff]  }
  0x50   :  { %332 = vmatpush1.bf16.msra.mxu0 %v2228_v3  ;;  %373 = vmatpush1.bf16.msra.mxu1 %v2229_v4  ;;  %v2235_v8 = vld [vmem:[#allocation2 + $0xc8] ss:$16 sps:$4 sm:$0xff]   ;;  %v2236_v9 = vld [vmem:[#allocation2 + $0xa4] ss:$16 sps:$4 sm:$0xff]   ;;  %v2238_v10 = vld [vmem:[#allocation2 + $0xac] ss:$16 sps:$4 sm:$0xff]  }
  0x51   :  { %333 = vmatprep.subr.bf16.mxu0 %v2230_v5  ;;  %374 = vmatprep.subr.bf16.mxu1 %v2232_v6  ;;  %v2240_v11 = vld [vmem:[#allocation2 + $0xa0] ss:$16 sps:$4 sm:$0xff]   ;;  %v2241_v12 = vld [vmem:[#allocation2 + $0xa8] ss:$16 sps:$4 sm:$0xff]   ;;  %v2242_v13 = vld [vmem:[#allocation2 + $0x84] ss:$16 sps:$4 sm:$0xff]   ;;  %v151_v5 = vlaneseq }
  0x52   :  { %v2244_v14 = vld [vmem:[#allocation2 + $0x8c] ss:$16 sps:$4 sm:$0xff]   ;;  %v2246_v15 = vld [vmem:[#allocation2 + $0x80] ss:$16 sps:$4 sm:$0xff]   ;;  %v2247_v16 = vld [vmem:[#allocation2 + $0x88] ss:$16 sps:$4 sm:$0xff]  }
  0x53   :  { %v2248_v17 = vld [vmem:[#allocation2 + $0x64] ss:$16 sps:$4 sm:$0xff]   ;;  %v2250_v18 = vld [vmem:[#allocation2 + $0x6c] ss:$16 sps:$4 sm:$0xff]   ;;  %v2252_v19 = vld [vmem:[#allocation2 + $0x60] ss:$16 sps:$4 sm:$0xff]  }
  0x54   :  { %334 = vmatpush1.bf16.msra.mxu0 %v2234_v7  ;;  %375 = vmatpush1.bf16.msra.mxu1 %v2235_v8  ;;  %v2253_v20 = vld [vmem:[#allocation2 + $0x68] ss:$16 sps:$4 sm:$0xff]   ;;  %v2254_v21 = vld [vmem:[#allocation2 + $0x44] ss:$16 sps:$4 sm:$0xff]   ;;  %v2256_v22 = vld [vmem:[#allocation2 + $0x4c] ss:$16 sps:$4 sm:$0xff]  }
  0x55   :  { %335 = vmatprep.subr.bf16.mxu0 %v2236_v9  ;;  %376 = vmatprep.subr.bf16.mxu1 %v2238_v10  ;;  %v2258_v23 = vld [vmem:[#allocation2 + $0x40] ss:$16 sps:$4 sm:$0xff]   ;;  %v2259_v24 = vld [vmem:[#allocation2 + $0x48] ss:$16 sps:$4 sm:$0xff]   ;;  %v2260_v25 = vld [vmem:[#allocation2 + $0x24] ss:$16 sps:$4 sm:$0xff]  }
  0x56   :  { %v2262_v26 = vld [vmem:[#allocation2 + $0x2c] ss:$16 sps:$4 sm:$0xff]   ;;  %v2264_v27 = vld [vmem:[#allocation2 + $0x20] ss:$16 sps:$4 sm:$0xff]   ;;  %v2265_v28 = vld [vmem:[#allocation2 + $0x28] ss:$16 sps:$4 sm:$0xff]  }
  0x57   :  { %v2266_v29 = vld [vmem:[#allocation2 + $0x4] ss:$16 sps:$4 sm:$0xff]   ;;  %v2268_v30 = vld [vmem:[#allocation2 + $0xc] ss:$16 sps:$4 sm:$0xff]   ;;  %v2270_v31 = vld [vmem:[#allocation2] ss:$16 sps:$4 sm:$0xff]  }
  0x58   :  { %336 = vmatpush1.bf16.msra.mxu0 %v2240_v11  ;;  %377 = vmatpush1.bf16.msra.mxu1 %v2241_v12  ;;  %v2271_v32 = vld [vmem:[#allocation2 + $0x8] ss:$16 sps:$4 sm:$0xff]   ;;  %v115_v33 = vld [vmem:[%s2730_s0] sm:$0xff]  ;;  %v2276_v39 = vld [vmem:[#allocation5 + $0x70] sm:$0xff]   ;;  %v2579_v4 = vmov 0.0   ;;  %v2657_v6 = vshrl.u32 %v151_v5, 7 }
  0x59   :  { %337 = vmatprep.subr.bf16.mxu0 %v2242_v13  ;;  %378 = vmatprep.subr.bf16.mxu1 %v2244_v14  ;;  %v2273_v35 = vld [vmem:[#allocation5 + $0xf8] sm:$0xff]   ;;  %v116_v38 = vpack.c.bf16 %v115_v33, %v115_v33  ;;  %v2277_v40 = vld [vmem:[#allocation5 + $0xf0] sm:$0xff]   ;;  %v2280_v43 = vld [vmem:[#allocation5 + $0x68] sm:$0xff]   ;;  %vm2580_vm4 = vmmov 0   ;;  %vm874_vm6 = vcmask 130048   ;;  %vm1033_vm8 = vcmask 1041408  }
  0x5a   :  { %v2274_v36 = vld [vmem:[#allocation5 + $0x38] sm:$0xff]   ;;  %v2278_v41 = vld [vmem:[#allocation5 + $0x30] sm:$0xff]   ;;  %v2281_v44 = vld [vmem:[#allocation5 + $0xe8] sm:$0xff]   ;;  %v153_v7 = vsub.s32 0, %v2657_v6  ;;  %v161_v8 = vsub.s32 2, %v2657_v6  ;;  %v157_v10 = vsub.s32 1, %v2657_v6 }
  0x5b   :  { %v2275_v37 = vld [vmem:[#allocation5 + $0xb8] sm:$0xff]   ;;  %v2279_v42 = vld [vmem:[#allocation5 + $0xb0] sm:$0xff]   ;;  %v2282_v45 = vld [vmem:[#allocation5 + $0x28] sm:$0xff]   ;;  %v165_v11 = vsub.s32 3, %v2657_v6  ;;  %vm1029_vm9 = vcmask 15360  }
  0x5c   :  { %338 = vmatpush1.bf16.msra.mxu0 %v2246_v15  ;;  %379 = vmatpush1.bf16.msra.mxu1 %v2247_v16  ;;  %v2283_v46 = vld [vmem:[#allocation5 + $0xa8] sm:$0xff]   ;;  %v2284_v47 = vld [vmem:[#allocation5 + $0x60] sm:$0xff]   ;;  %v2288_v51 = vld [vmem:[#allocation5 + $0x58] sm:$0xff]  }
  0x5d   :  { %339 = vmatprep.subr.bf16.mxu0 %v2248_v17  ;;  %380 = vmatprep.subr.bf16.mxu1 %v2250_v18  ;;  %v2285_v48 = vld [vmem:[#allocation5 + $0xe0] sm:$0xff]   ;;  %v2289_v52 = vld [vmem:[#allocation5 + $0xd8] sm:$0xff]   ;;  %v2292_v55 = vld [vmem:[#allocation5 + $0x50] sm:$0xff]  }
  0x5e   :  { %v2286_v49 = vld [vmem:[#allocation5 + $0x20] sm:$0xff]   ;;  %v2290_v53 = vld [vmem:[#allocation5 + $0x18] sm:$0xff]   ;;  %v2293_v56 = vld [vmem:[#allocation5 + $0xd0] sm:$0xff]  }
  0x5f   :  { %v2287_v50 = vld [vmem:[#allocation5 + $0xa0] sm:$0xff]   ;;  %v2291_v54 = vld [vmem:[#allocation5 + $0x98] sm:$0xff]   ;;  %v2294_v57 = vld [vmem:[#allocation5 + $0x10] sm:$0xff]  }
  0x60   :  { %340 = vmatpush1.bf16.msra.mxu0 %v2252_v19  ;;  %381 = vmatpush1.bf16.msra.mxu1 %v2253_v20  ;;  %v2295_v58 = vld [vmem:[#allocation5 + $0x90] sm:$0xff]   ;;  %v2296_v59 = vld [vmem:[#allocation5 + $0x48] sm:$0xff]   ;;  %v2300_v63 = vld [vmem:[#allocation5 + $0x40] sm:$0xff]  }
  0x61   :  { %341 = vmatprep.subr.bf16.mxu0 %v2254_v21  ;;  %382 = vmatprep.subr.bf16.mxu1 %v2256_v22  ;;  %v2297_v60 = vld [vmem:[#allocation5 + $0xc8] sm:$0xff]   ;;  %v2301_v1 = vld [vmem:[#allocation5 + $0xc0] sm:$0xff]  }
  0x62   :  { %v2298_v61 = vld [vmem:[#allocation5 + $0x8] sm:$0xff]   ;;  %v2302_v2 = vld [vmem:[#allocation5] sm:$0xff]  }
  0x63   :  { %v2299_v62 = vld [vmem:[#allocation5 + $0x88] sm:$0xff]   ;;  %v2303_v3 = vld [vmem:[#allocation5 + $0x80] sm:$0xff]  }
  0x64   :  { %342 = vmatpush1.bf16.msra.mxu0 %v2258_v23  ;;  %383 = vmatpush1.bf16.msra.mxu1 %v2259_v24  ;;  %v149_v9 = vld [vmem:[#allocation11] ss:$8 sm:$0xf] }
  0x65   :  { %343 = vmatprep.subr.bf16.mxu0 %v2260_v25  ;;  %384 = vmatprep.subr.bf16.mxu1 %v2262_v26  ;;  %v154_v12 = vrot.slane %v149_v9, %v153_v7  ;;  %v162_v13 = vrot.slane %v149_v9, %v161_v8  ;;  %v158_v16 = vrot.slane %v149_v9, %v157_v10 }
  0x66   :  { %v166_v17 = vrot.slane %v149_v9, %v165_v11 }
  0x68   :  { %344 = vmatpush1.bf16.msra.mxu0 %v2264_v27  ;;  %385 = vmatpush1.bf16.msra.mxu1 %v2265_v28 }
  0x69   :  { %345 = vmatprep.subr.bf16.mxu0 %v2266_v29  ;;  %386 = vmatprep.subr.bf16.mxu1 %v2268_v30 }
  0x6c   :  { %346 = vmatpush1.bf16.msra.mxu0 %v2270_v31  ;;  %387 = vmatpush1.bf16.msra.mxu1 %v2271_v32 }
  0x6d   :  { %2029 = vmatprep.subr.bf16.mxu0 %v2272_v34  ;;  %2051 = vmatprep.subr.bf16.mxu1 %v2273_v35 }
  0x6f   :  { %364 = vmatmul.mubr.bf16.vlgmr.msra.gmra.mxu0 %v116_v38  ;;  %405 = vmatmul.mubr.bf16.vlgmr.msra.gmra.mxu1 %v116_v38 }
  0x70   :  { %2030 = vmatpush3.bf16.msra.mxu0 %v2274_v36  ;;  %2052 = vmatpush3.bf16.msra.mxu1 %v2275_v37 }
  0x71   :  { %2031 = vmatprep.subr.bf16.mxu0 %v2276_v39  ;;  %2053 = vmatprep.subr.bf16.mxu1 %v2277_v40 }
  0x74   :  { %2032 = vmatpush3.bf16.msra.mxu0 %v2278_v41  ;;  %2054 = vmatpush3.bf16.msra.mxu1 %v2279_v42 }
  0x75   :  { %2033 = vmatprep.subr.bf16.mxu0 %v2280_v43  ;;  %2055 = vmatprep.subr.bf16.mxu1 %v2281_v44 }
  0x78   :  { %2034 = vmatpush3.bf16.msra.mxu0 %v2282_v45  ;;  %2056 = vmatpush3.bf16.msra.mxu1 %v2283_v46 }
  0x79   :  { %2035 = vmatprep.subr.bf16.mxu0 %v2284_v47  ;;  %2057 = vmatprep.subr.bf16.mxu1 %v2285_v48  ;;  %v794_v47 = vld [vmem:[#allocation10 + $0x78] sm:$0xff] }
  0x7c   :  { %2036 = vmatpush3.bf16.msra.mxu0 %v2286_v49  ;;  %2058 = vmatpush3.bf16.msra.mxu1 %v2287_v50  ;;  %v793_v49 = vld [vmem:[#allocation10 + $0x70] sm:$0xff]  ;;  %v792_v50 = vld [vmem:[#allocation10 + $0x68] sm:$0xff] }
  0x7d   :  { %2037 = vmatprep.subr.bf16.mxu0 %v2288_v51  ;;  %2059 = vmatprep.subr.bf16.mxu1 %v2289_v52  ;;  %v791_v51 = vld [vmem:[#allocation10 + $0x60] sm:$0xff]  ;;  %v790_v52 = vld [vmem:[#allocation10 + $0x58] sm:$0xff] }
  0x80   :  { %2038 = vmatpush3.bf16.msra.mxu0 %v2290_v53  ;;  %2060 = vmatpush3.bf16.msra.mxu1 %v2291_v54  ;;  %v789_v53 = vld [vmem:[#allocation10 + $0x50] sm:$0xff]  ;;  %v788_v54 = vld [vmem:[#allocation10 + $0x48] sm:$0xff] }
  0x81   :  { %2039 = vmatprep.subr.bf16.mxu0 %v2292_v55  ;;  %2061 = vmatprep.subr.bf16.mxu1 %v2293_v56  ;;  %v787_v55 = vld [vmem:[#allocation10 + $0x40] sm:$0xff]  ;;  %v786_v56 = vld [vmem:[#allocation10 + $0x38] sm:$0xff] }
  0x84   :  { %2040 = vmatpush3.bf16.msra.mxu0 %v2294_v57  ;;  %2062 = vmatpush3.bf16.msra.mxu1 %v2295_v58  ;;  %v785_v57 = vld [vmem:[#allocation10 + $0x30] sm:$0xff]  ;;  %v784_v58 = vld [vmem:[#allocation10 + $0x28] sm:$0xff] }
  0x85   :  { %2041 = vmatprep.subr.bf16.mxu0 %v2296_v59  ;;  %2063 = vmatprep.subr.bf16.mxu1 %v2297_v60  ;;  %v783_v59 = vld [vmem:[#allocation10 + $0x20] sm:$0xff]  ;;  %v782_v60 = vld [vmem:[#allocation10 + $0x18] sm:$0xff] }
  0x88   :  { %2042 = vmatpush3.bf16.msra.mxu0 %v2298_v61  ;;  %2064 = vmatpush3.bf16.msra.mxu1 %v2299_v62  ;;  %v781_v61 = vld [vmem:[#allocation10 + $0x10] sm:$0xff]  ;;  %v780_v62 = vld [vmem:[#allocation10 + $0x8] sm:$0xff] }
  0x89   :  { %2043 = vmatprep.subr.bf16.mxu0 %v2300_v63  ;;  %2065 = vmatprep.subr.bf16.mxu1 %v2301_v1  ;;  %v779_v63 = vld [vmem:[#allocation10] sm:$0xff] }
  0x8c   :  { %2044 = vmatpush3.bf16.msra.mxu0 %v2302_v2  ;;  %2066 = vmatpush3.bf16.msra.mxu1 %v2303_v3  ;;  %v501_v3 = vld [vmem:[#allocation11 + $0x1] ss:$0 sm:$0xff] }
  0x8d   :  { %2145 = vmatprep.subr.mxu0 %v2579_v4  ;;  %2180 = vmatprep.subr.mxu1 %v2579_v4 }
 0x12f   :  { %v365_v14 = vpop.f32.mrf.mxu0  ;;  %v406_v15 = vpop.f32.mrf.mxu1 }
 0x130   :  { %v366_v18 = vadd.f32 %v365_v14, %v154_v12  ;;  %v407_v19 = vadd.f32 %v406_v15, %v162_v13 }
 0x131   :  { %v367_v20 = vpop.f32.mrf.mxu0  ;;  %v408_v21 = vpop.f32.mrf.mxu1 }
 0x132   :  { %v417_v22 = vmul.f32 1.442695, %v366_v18  ;;  %v421_v23 = vmul.f32 1.442695, %v407_v19  ;;  %v368_v24 = vadd.f32 %v367_v20, %v158_v16  ;;  %v409_v25 = vadd.f32 %v408_v21, %v166_v17 }
 0x133   :  { %v369_v26 = vpop.f32.mrf.mxu0  ;;  %v410_v27 = vpop.f32.mrf.mxu1  ;;  %vm413_vm0 = vcmp.gt.f32.partialorder %v366_v18, 0.0  ;;  %vm415_vm1 = vcmp.gt.f32.partialorder %v407_v19, 0.0 }
 0x134   :  { %2384 = vpow2.f32 %v417_v22  ;;  %v419_v28 = vmul.f32 1.442695, %v368_v24  ;;  %v423_v31 = vmul.f32 1.442695, %v409_v25  ;;  %vm414_vm2 = vcmp.gt.f32.partialorder %v368_v24, 0.0 }
 0x135   :  { %2386 = vpow2.f32 %v421_v23  ;;  %v370_v29 = vpop.f32.mrf.mxu0  ;;  %v411_v30 = vpop.f32.mrf.mxu1  ;;  %vm416_vm3 = vcmp.gt.f32.partialorder %v409_v25, 0.0  ;;  %v795_v26 = vld [vmem:[#allocation11 + $0x2] ss:$0 sm:$0xff] }
 0x136   :  { %2388 = vpow2.f32 %v419_v28 }
 0x137   :  { %2390 = vpow2.f32 %v423_v31 }
 0x141   :  { %v2385_v32 = vpop.eup %2384 }
 0x142   :  { %v2387_v33 = vpop.eup %2386  ;;  %v1915_v34 = vadd.f32 -1.0, %v2385_v32 }
 0x143   :  { %v1917_v35 = vadd.f32 -1.0, %v2387_v33  ;;  %v2389_v36 = vpop.eup %2388  ;;  %v949_v33 = vld [vmem:[#allocation10 + $0x98] sm:$0xff] }
 0x144   :  { %v2391_v37 = vpop.eup %2390  ;;  %v1916_v38 = vadd.f32 -1.0, %v2389_v36  ;;  %v429_v39 = vsel %vm413_vm0, %v366_v18, %v1915_v34  ;;  %v1027_v36 = vld [vmem:[#allocation10 + $0xa0] sm:$0x3] }
 0x145   :  { %v1918_v40 = vadd.f32 -1.0, %v2391_v37  ;;  %v431_v41 = vsel %vm415_vm1, %v407_v19, %v1917_v35  ;;  %v433_v45 = vpack.c.bf16 %v429_v39, %v429_v39  ;;  %v948_v35 = vld [vmem:[#allocation10 + $0x90] sm:$0xff]  ;;  %v873_v37 = vld [vmem:[#allocation11 + $0x3] ss:$0 sm:$0xff] }
 0x146   :  { %v430_v42 = vsel %vm414_vm2, %v368_v24, %v1916_v38  ;;  %v435_v48 = vpack.c.bf16 %v431_v41, %v431_v41  ;;  %v872_v24 = vld [vmem:[#allocation10 + $0x88] sm:$0xff]  ;;  %v950_v41 = vld [vmem:[#allocation11 + $0x4] ss:$0 sm:$0xff] }
 0x147   :  { %v434_v43 = vpack.c.bf16 %v430_v42, %v430_v42  ;;  %v432_v44 = vsel %vm416_vm3, %v409_v25, %v1918_v40  ;;  %v871_v25 = vld [vmem:[#allocation10 + $0x80] sm:$0xff] }
 0x148   :  { %v436_v46 = vpack.c.bf16 %v432_v44, %v432_v44 }
 0x149   :  { %726 = vmatprep.mubr.bf16.mxu0 %v434_v43 }
 0x14a   :  { %766 = vmatprep.mubr.bf16.mxu1 %v436_v46  ;;  %727 = vmatmul.mubr.bf16.vlgmr.msra.gmra.mxu0 %v433_v45 }
 0x14b   :  { %767 = vmatmul.mubr.bf16.vlgmr.msra.gmra.mxu1 %v435_v48  ;;  %2146 = vmatpush3.msra.mxu0 %v794_v47  ;;  %v1021_v47 = vld [vmem:[%s2731_s1] sm:$0xff]  ;;  %s2581_s1 = smov [#allocation13]  }
 0x14c   :  { %2147 = vmatprep.subr.mxu0 %v2579_v4  ;;  %2177 = vmatprep.mubr.msk.f32.mxu0 %vm2580_vm4, %v2579_v4 }
 0x14d   :  { %2148 = vmatpush3.msra.mxu0 %v793_v49  ;;  %2184 = vmatprep.mubr.msk.f32.mxu1 %vm2580_vm4, %v2579_v4 }
 0x14e   :  { %2149 = vmatprep.subr.mxu0 %v2579_v4  ;;  %2181 = vmatpush3.msra.mxu1 %v872_v24  ;;  %v2334_v24 = vld [vmem:[#allocation7 + $0x40] ss:$16 sps:$4 sm:$0xff]  }
 0x14f   :  { %2150 = vmatpush3.msra.mxu0 %v792_v50  ;;  %2182 = vmatprep.subr.mxu1 %v2579_v4 }
 0x150   :  { %2151 = vmatprep.subr.mxu0 %v2579_v4  ;;  %2183 = vmatpush3.msra.mxu1 %v871_v25  ;;  %v2337_v25 = vld [vmem:[#allocation7 + $0x48] ss:$16 sps:$4 sm:$0xff]  }
 0x151   :  { %2152 = vmatpush3.msra.mxu0 %v791_v51  ;;  %2187 = vmatprep.subr.mxu1 %v2579_v4  ;;  %v1113_v51 = vld [vmem:[#allocation10 + $0xb0] sm:$0xff] }
 0x152   :  { %2153 = vmatprep.subr.mxu0 %v2579_v4 }
 0x153   :  { %2154 = vmatpush3.msra.mxu0 %v790_v52  ;;  %v1112_v52 = vld [vmem:[#allocation10 + $0xa8] sm:$0xff] }
 0x154   :  { %2155 = vmatprep.subr.mxu0 %v2579_v4 }
 0x155   :  { %2156 = vmatpush3.msra.mxu0 %v789_v53  ;;  %v2306_v53 = vld [vmem:[#allocation7 + $0xe4] ss:$16 sps:$4 sm:$0xff]  }
 0x156   :  { %2157 = vmatprep.subr.mxu0 %v2579_v4 }
 0x157   :  { %2158 = vmatpush3.msra.mxu0 %v788_v54  ;;  %v2307_v54 = vld [vmem:[#allocation7 + $0xe8] ss:$16 sps:$4 sm:$0xff]  }
 0x158   :  { %2159 = vmatprep.subr.mxu0 %v2579_v4 }
 0x159   :  { %2160 = vmatpush3.msra.mxu0 %v787_v55  ;;  %v2309_v55 = vld [vmem:[#allocation7 + $0xec] ss:$16 sps:$4 sm:$0xff]  }
 0x15a   :  { %2161 = vmatprep.subr.mxu0 %v2579_v4 }
 0x15b   :  { %2162 = vmatpush3.msra.mxu0 %v786_v56  ;;  %v2315_v56 = vld [vmem:[#allocation7 + $0xcc] ss:$16 sps:$4 sm:$0xff]  }
 0x15c   :  { %2163 = vmatprep.subr.mxu0 %v2579_v4 }
 0x15d   :  { %2164 = vmatpush3.msra.mxu0 %v785_v57  ;;  %v2313_v57 = vld [vmem:[#allocation7 + $0xc8] ss:$16 sps:$4 sm:$0xff]  }
 0x15e   :  { %2165 = vmatprep.subr.mxu0 %v2579_v4 }
 0x15f   :  { %2166 = vmatpush3.msra.mxu0 %v784_v58  ;;  %v1028_v58 = vld [vmem:[#allocation11 + $0x5] ss:$0 sm:$0xff] }
 0x160   :  { %2167 = vmatprep.subr.mxu0 %v2579_v4 }
 0x161   :  { %2168 = vmatpush3.msra.mxu0 %v783_v59 }
 0x162   :  { %2169 = vmatprep.subr.mxu0 %v2579_v4 }
 0x163   :  { %2170 = vmatpush3.msra.mxu0 %v782_v60 }
 0x164   :  { %2171 = vmatprep.subr.mxu0 %v2579_v4 }
 0x165   :  { %2172 = vmatpush3.msra.mxu0 %v781_v61 }
 0x166   :  { %2173 = vmatprep.subr.mxu0 %v2579_v4 }
 0x167   :  { %2174 = vmatpush3.msra.mxu0 %v780_v62 }
 0x168   :  { %2175 = vmatprep.subr.mxu0 %v2579_v4 }
 0x169   :  { %2176 = vmatpush3.msra.mxu0 %v779_v63 }
 0x16a   :  { %1450 = vmatprep.subr.bf16.mxu0 %v2309_v55  ;;  %v2364_v55 = vld [vmem:[#allocation8 + $0x60] sm:$0xff]  }
 0x20a   :  { %v2045_v1 = vpop.f32.mrf.mxu0 }
 0x20b   :  { %v2067_v2 = vpop.f32.mrf.mxu1 }
 0x20c   :  { %v2046_v5 = vpop.f32.mrf.mxu0 }
 0x20d   :  { %v2047_v9 = vadd.f32 %v2046_v5, %v2045_v1  ;;  %v2068_v12 = vpop.f32.mrf.mxu1  ;;  %v2304_v1 = vld [vmem:[#allocation7 + $0xe0] ss:$16 sps:$4 sm:$0xff]  }
 0x20e   :  { %v2048_v13 = vpop.f32.mrf.mxu0  ;;  %v2069_v15 = vadd.f32 %v2068_v12, %v2067_v2  ;;  %v2312_v2 = vld [vmem:[#allocation7 + $0xc4] ss:$16 sps:$4 sm:$0xff]   ;;  %v2310_v5 = vld [vmem:[#allocation7 + $0xc0] ss:$16 sps:$4 sm:$0xff]   ;;  %v2321_v12 = vld [vmem:[#allocation7 + $0xac] ss:$16 sps:$4 sm:$0xff]  }
 0x20f   :  { %v729_v14 = vadd.f32 %v2047_v9, %v501_v3  ;;  %v2070_v16 = vpop.f32.mrf.mxu1  ;;  %v2318_v9 = vld [vmem:[#allocation7 + $0xa4] ss:$16 sps:$4 sm:$0xff]   ;;  %v2316_v13 = vld [vmem:[#allocation7 + $0xa0] ss:$16 sps:$4 sm:$0xff]  }
 0x210   :  { %v2049_v17 = vpop.f32.mrf.mxu0  ;;  %v2327_v16 = vld [vmem:[#allocation7 + $0x8c] ss:$16 sps:$4 sm:$0xff]  }
 0x211   :  { %v769_v18 = vadd.f32 %v2069_v15, %v729_v14  ;;  %v2071_v19 = vpop.f32.mrf.mxu1  ;;  %v2319_v14 = vld [vmem:[#allocation7 + $0xa8] ss:$16 sps:$4 sm:$0xff]   ;;  %v2324_v15 = vld [vmem:[#allocation7 + $0x84] ss:$16 sps:$4 sm:$0xff]   ;;  %v2322_v17 = vld [vmem:[#allocation7 + $0x80] ss:$16 sps:$4 sm:$0xff]  }
 0x212   :  { %v2330_v19 = vld [vmem:[#allocation7 + $0x64] ss:$16 sps:$4 sm:$0xff]  }
 0x213   :  { %v775_v20 = vmul.f32 1.442695, %v769_v18  ;;  %vm774_vm5 = vcmp.gt.f32.partialorder %v769_v18, 0.0 }
 0x215   :  { %2392 = vpow2.f32 %v775_v20  ;;  %v2328_v20 = vld [vmem:[#allocation7 + $0x60] ss:$16 sps:$4 sm:$0xff]  }
 0x222   :  { %v2393_v21 = vpop.eup %2392 }
 0x223   :  { %v1951_v22 = vadd.f32 -1.0, %v2393_v21  ;;  %v2331_v21 = vld [vmem:[#allocation7 + $0x68] ss:$16 sps:$4 sm:$0xff]  }
 0x225   :  { %v778_v23 = vsel %vm774_vm5, %v769_v18, %v1951_v22  ;;  %v2325_v18 = vld [vmem:[#allocation7 + $0x88] ss:$16 sps:$4 sm:$0xff]   ;;  %v2336_v22 = vld [vmem:[#allocation7 + $0x44] ss:$16 sps:$4 sm:$0xff]  }
 0x226   :  { %2178 = vmatmul.mubr.f32.vlgmr.msra.gmra.mxu0 %v778_v23  ;;  %v2339_v23 = vld [vmem:[#allocation7 + $0x4c] ss:$16 sps:$4 sm:$0xff]  }
 0x227   :  { %1482 = vmatprep.mubr.bf16.mxu0 %v2578_v0  ;;  %1451 = vmatpush1.bf16.msra.mxu0 %v2307_v54  ;;  %v2363_v54 = vld [vmem:[#allocation8 + $0xa8] sm:$0xff]  }
 0x228   :  { %1452 = vmatprep.subr.bf16.mxu0 %v2315_v56  ;;  %v2365_v56 = vld [vmem:[#allocation8 + $0xe0] sm:$0xff]  }
 0x22b   :  { %1453 = vmatpush1.bf16.msra.mxu0 %v2313_v57  ;;  %v2366_v57 = vld [vmem:[#allocation8 + $0x20] sm:$0xff]  }
 0x22c   :  { %1454 = vmatprep.subr.bf16.mxu0 %v2321_v12  ;;  %v2379_v12 = vld [vmem:[#allocation8 + $0x88] sm:$0xff]  }
 0x22f   :  { %1455 = vmatpush1.bf16.msra.mxu0 %v2319_v14  ;;  %v2381_v14 = vld [vmem:[#allocation8 + $0xc0] sm:$0xff]  }
 0x230   :  { %1456 = vmatprep.subr.bf16.mxu0 %v2327_v16  ;;  %v2383_v16 = vld [vmem:[#allocation8 + $0x80] sm:$0xff]  }
 0x233   :  { %1457 = vmatpush1.bf16.msra.mxu0 %v2325_v18 }
 0x2e6   :  { %v862_v27 = vpop.f32.mrf.mxu0 }
 0x2e7   :  { %v863_v28 = vadd.f32 %v862_v27, %v795_v26  ;;  %v2342_v26 = vld [vmem:[#allocation7 + $0x24] ss:$16 sps:$4 sm:$0xff]   ;;  %v2345_v27 = vld [vmem:[#allocation7 + $0x2c] ss:$16 sps:$4 sm:$0xff]  }
 0x2e8   :  { %v2179_v29 = vpop.f32.mrf.mxu0 }
 0x2e9   :  { %v867_v30 = vmul.f32 1.442695, %v863_v28  ;;  %vm866_vm7 = vcmp.gt.f32.partialorder %v863_v28, 0.0  ;;  %v2343_v29 = vld [vmem:[#allocation7 + $0x28] ss:$16 sps:$4 sm:$0xff]  }
 0x2eb   :  { %2394 = vpow2.f32 %v867_v30  ;;  %v2348_v30 = vld [vmem:[#allocation7 + $0x4] ss:$16 sps:$4 sm:$0xff]  }
 0x2f8   :  { %v2395_v31 = vpop.eup %2394 }
 0x2f9   :  { %v1952_v32 = vadd.f32 -1.0, %v2395_v31  ;;  %v2351_v31 = vld [vmem:[#allocation7 + $0xc] ss:$16 sps:$4 sm:$0xff]  }
 0x2fb   :  { %v870_v34 = vsel %vm866_vm7, %v863_v28, %v1952_v32  ;;  %v2340_v28 = vld [vmem:[#allocation7 + $0x20] ss:$16 sps:$4 sm:$0xff]  }
 0x2fc   :  { %2185 = vmatmul.mubr.msk.f32.vlgmr.msra.gmra.mxu1 %vm874_vm6, %v870_v34  ;;  %v2346_v32 = vld [vmem:[#allocation7] ss:$16 sps:$4 sm:$0xff]  }
 0x2fd   :  { %2188 = vmatpush3.msra.mxu1 %v949_v33  ;;  %2191 = vmatprep.mubr.msk.f32.mxu1 %vm2580_vm4, %v2579_v4  ;;  %v2349_v33 = vld [vmem:[#allocation7 + $0x8] ss:$16 sps:$4 sm:$0xff]  }
 0x2fe   :  { %2189 = vmatprep.subr.mxu1 %v2579_v4 }
 0x2ff   :  { %2190 = vmatpush3.msra.mxu1 %v948_v35  ;;  %v2353_v35 = vld [vmem:[#allocation8 + $0xf8] sm:$0xff]  }
 0x300   :  { %2192 = vmatmul.mubr.msk.f32.vlgmr.msra.gmra.mxu1 %vm874_vm6, %v870_v34  ;;  %2194 = vmatprep.subr.mxu1 %v2579_v4  ;;  %v2352_v34 = vld [vmem:[#allocation8 + $0x78] sm:$0xff]  }
 0x301   :  { %2196 = vmatprep.mubr.msk.f32.mxu1 %vm2580_vm4, %v2579_v4  ;;  %2195 = vmatpush3.msk.msra.mxu1 %vm1033_vm8, %v1027_v36  ;;  %v1114_v36 = vld [vmem:[#allocation11 + $0x6] ss:$0 sm:$0xff] }
 0x302   :  { %2199 = vmatprep.subr.mxu1 %v2579_v4 }
 0x3bc   :  { %v944_v38 = vpop.f32.mrf.mxu1 }
 0x3bd   :  { %v945_v39 = vadd.f32 %v944_v38, %v873_v37 }
 0x3be   :  { %v2186_v40 = vpop.f32.mrf.mxu1 }
 0x3bf   :  { %1858 = vst.msk [vmem:[%s2739_s9] sm:$0xff] %vm1029_vm9, %v945_v39 }
 0x3c0   :  { %v1017_v42 = vpop.f32.mrf.mxu1 }
 0x3c1   :  { %v1018_v43 = vadd.f32 %v1017_v42, %v950_v41 }
 0x3c2   :  { %v2193_v44 = vpop.f32.mrf.mxu1 }
 0x3c3   :  { %v1022_v45 = vmul.f32 0.5, %v1018_v43  ;;  %2028 = vst.msk [vmem:[%s2739_s9 + $0x8] sm:$0xff] %vm1029_vm9, %v1018_v43  ;;  %v2354_v44 = vld [vmem:[#allocation8 + $0x38] sm:$0xff]   ;;  %s1867_s9 = sshll.u32 %s2581_s1, 4  ;;  %s1868_s9 = int_to_ptr.vmem [resolvable:$true] %s1867_s9 }
 0x3c4   :  { %s2534_s26 = scalar_lea.vmem %s1868_s9, 128  ;;  %p2539_p3 = scmp.lt.s32.totalorder %s1868_s9, %s1868_s9 }
 0x3c5   :  { %v1023_v46 = vmul.f32 1.442695, %v1022_v45  ;;  %v2355_v45 = vld [vmem:[#allocation8 + $0xb8] sm:$0xff]   ;;  %p2535_p2 = scmp.ne.s32.totalorder %s1868_s9, %s2534_s26  ;;  %p2540_p4 = scmp.lt.s32.totalorder %s2534_s26, %s2534_s26 }
 0x3c7   :  { %2396 = vpow2.f32 %v1023_v46  ;;  %p2541_p5 = por %p2540_p4, %p2539_p3 }
 0x3c9   :  { %p2542_p6 = pnand %p2541_p5, %p2535_p2 }
 0x3d4   :  { %v2397_v48 = vpop.eup %2396 }
 0x3d5   :  { %v1025_v49 = vmul.f32 %v2397_v48, %v1021_v47  ;;  %v2356_v47 = vld [vmem:[#allocation8 + $0x70] sm:$0xff]  }
 0x3d6   :  { %v2357_v48 = vld [vmem:[#allocation8 + $0xf0] sm:$0xff]  }
 0x3d7   :  { %v1026_v50 = vadd.f32 %v1025_v49, %v945_v39  ;;  %v2358_v49 = vld [vmem:[#allocation8 + $0x30] sm:$0xff]  }
 0x3d9   :  { %2197 = vmatmul.mubr.msk.f32.vlgmr.msra.gmra.mxu1 %vm1029_vm9, %v1026_v50  ;;  %v2359_v50 = vld [vmem:[#allocation8 + $0xb0] sm:$0xff]  }
 0x3da   :  { %2203 = vmatprep.mubr.msk.f32.mxu1 %vm2580_vm4, %v2579_v4  ;;  %2200 = vmatpush3.msra.mxu1 %v1113_v51  ;;  %v2360_v51 = vld [vmem:[#allocation8 + $0x68] sm:$0xff]  }
 0x3db   :  { %2201 = vmatprep.subr.mxu1 %v2579_v4 }
 0x3dc   :  { %2202 = vmatpush3.msra.mxu1 %v1112_v52  ;;  %v2361_v52 = vld [vmem:[#allocation8 + $0xe8] sm:$0xff]  }
 0x3dd   :  { %1409 = vmatprep.subr.bf16.mxu1 %v2306_v53  ;;  %v2362_v53 = vld [vmem:[#allocation8 + $0x28] sm:$0xff]  }
 0x499   :  { %v1103_v59 = vpop.f32.mrf.mxu1 }
 0x49a   :  { %v1104_v60 = vadd.f32 %v1103_v59, %v1028_v58  ;;  %v2367_v58 = vld [vmem:[#allocation8 + $0xa0] sm:$0xff]   ;;  %v2368_v59 = vld [vmem:[#allocation8 + $0x58] sm:$0xff]  }
 0x49b   :  { %v2198_v61 = vpop.f32.mrf.mxu1 }
 0x49c   :  { %v1108_v62 = vmul.f32 1.442695, %v1104_v60  ;;  %vm1107_vm10 = vcmp.gt.f32.partialorder %v1104_v60, 0.0  ;;  %v2370_v61 = vld [vmem:[#allocation8 + $0x18] sm:$0xff]  }
 0x49e   :  { %2398 = vpow2.f32 %v1108_v62  ;;  %v2371_v62 = vld [vmem:[#allocation8 + $0x98] sm:$0xff]  }
 0x4ab   :  { %v2399_v63 = vpop.eup %2398 }
 0x4ac   :  { %v1957_v4 = vadd.f32 -1.0, %v2399_v63  ;;  %v2372_v63 = vld [vmem:[#allocation8 + $0x50] sm:$0xff]  }
 0x4ae   :  { %v1111_v3 = vsel %vm1107_vm10, %v1104_v60, %v1957_v4  ;;  %v2369_v60 = vld [vmem:[#allocation8 + $0xd8] sm:$0xff]   ;;  %v2373_v4 = vld [vmem:[#allocation8 + $0xd0] sm:$0xff]  }
 0x4af   :  { %2204 = vmatmul.mubr.msk.f32.vlgmr.msra.gmra.mxu1 %vm874_vm6, %v1111_v3  ;;  %v2376_v3 = vld [vmem:[#allocation8 + $0x48] sm:$0xff]  }
 0x4b0   :  { %1410 = vmatpush1.bf16.msra.mxu1 %v2304_v1  ;;  %1441 = vmatprep.mubr.bf16.mxu1 %v2578_v0  ;;  %v2333_v0 = vld [vmem:[#allocation7 + $0x6c] ss:$16 sps:$4 sm:$0xff]   ;;  %v2374_v1 = vld [vmem:[#allocation8 + $0x10] sm:$0xff]  }
 0x4b1   :  { %1411 = vmatprep.subr.bf16.mxu1 %v2312_v2  ;;  %1458 = vmatprep.subr.bf16.mxu0 %v2333_v0  ;;  %v2375_v2 = vld [vmem:[#allocation8 + $0x90] sm:$0xff]  }
 0x4b2   :  { %1459 = vmatpush1.bf16.msra.mxu0 %v2331_v21 }
 0x4b3   :  { %1460 = vmatprep.subr.bf16.mxu0 %v2339_v23 }
 0x4b4   :  { %1412 = vmatpush1.bf16.msra.mxu1 %v2310_v5  ;;  %v2377_v5 = vld [vmem:[#allocation8 + $0xc8] sm:$0xff]  }
 0x4b5   :  { %1413 = vmatprep.subr.bf16.mxu1 %v2318_v9  ;;  %v2378_v9 = vld [vmem:[#allocation8 + $0x8] sm:$0xff]  }
 0x4b6   :  { %1461 = vmatpush1.bf16.msra.mxu0 %v2337_v25 }
 0x4b7   :  { %1462 = vmatprep.subr.bf16.mxu0 %v2345_v27 }
 0x4b8   :  { %1414 = vmatpush1.bf16.msra.mxu1 %v2316_v13  ;;  %v2380_v13 = vld [vmem:[#allocation8 + $0x40] sm:$0xff]  }
 0x4b9   :  { %1415 = vmatprep.subr.bf16.mxu1 %v2324_v15  ;;  %v2382_v15 = vld [vmem:[#allocation8] sm:$0xff]  }
 0x4ba   :  { %1463 = vmatpush1.bf16.msra.mxu0 %v2343_v29 }
 0x4bb   :  { %1464 = vmatprep.subr.bf16.mxu0 %v2351_v31 }
 0x4bc   :  { %1416 = vmatpush1.bf16.msra.mxu1 %v2322_v17  ;;  %v1227_v17 = vld [vmem:[#allocation11 + $0x7] ss:$8 sm:$0xf] }
 0x4bd   :  { %1417 = vmatprep.subr.bf16.mxu1 %v2330_v19  ;;  %v1232_v18 = vrot.slane %v1227_v17, %v153_v7  ;;  %v1240_v19 = vrot.slane %v1227_v17, %v161_v8  ;;  %v1236_v21 = vrot.slane %v1227_v17, %v157_v10 }
 0x4be   :  { %1465 = vmatpush1.bf16.msra.mxu0 %v2349_v33 }
 0x4bf   :  { %2123 = vmatprep.subr.bf16.mxu0 %v2353_v35 }
 0x4c0   :  { %1418 = vmatpush1.bf16.msra.mxu1 %v2328_v20 }
 0x4c1   :  { %1419 = vmatprep.subr.bf16.mxu1 %v2336_v22  ;;  %v1244_v22 = vrot.slane %v1227_v17, %v165_v11 }
 0x4c4   :  { %1420 = vmatpush1.bf16.msra.mxu1 %v2334_v24 }
 0x4c5   :  { %1421 = vmatprep.subr.bf16.mxu1 %v2342_v26 }
 0x4c8   :  { %1422 = vmatpush1.bf16.msra.mxu1 %v2340_v28 }
 0x4c9   :  { %1423 = vmatprep.subr.bf16.mxu1 %v2348_v30 }
 0x4cc   :  { %1424 = vmatpush1.bf16.msra.mxu1 %v2346_v32 }
 0x4cd   :  { %2101 = vmatprep.subr.bf16.mxu1 %v2352_v34 }
 0x56f   :  { %v1184_v37 = vpop.f32.mrf.mxu1 }
 0x570   :  { %v1185_v38 = vadd.f32 %v1184_v37, %v1114_v36 }
 0x571   :  { %v2205_v39 = vpop.f32.mrf.mxu1 }
 0x572   :  { %v1189_v40 = vmul.f32 1.442695, %v1185_v38  ;;  %vm1188_vm11 = vcmp.gt.f32.partialorder %v1185_v38, 0.0 }
 0x574   :  { %2400 = vpow2.f32 %v1189_v40 }
 0x581   :  { %v2401_v41 = vpop.eup %2400 }
 0x582   :  { %v1959_v42 = vadd.f32 -1.0, %v2401_v41 }
 0x584   :  { %v1192_v43 = vsel %vm1188_vm11, %v1185_v38, %v1959_v42 }
 0x585   :  { %v1193_v46 = vpack.c.bf16 %v1192_v43, %v1192_v43 }
 0x587   :  { %1442 = vmatmul.mubr.bf16.vlgmr.msra.gmra.mxu1 %v1193_v46  ;;  %1483 = vmatmul.mubr.bf16.vlgmr.msra.gmra.mxu0 %v1193_v46 }
 0x588   :  { %2102 = vmatpush3.bf16.msra.mxu1 %v2354_v44  ;;  %2124 = vmatpush3.bf16.msra.mxu0 %v2355_v45 }
 0x589   :  { %2103 = vmatprep.subr.bf16.mxu1 %v2356_v47  ;;  %2125 = vmatprep.subr.bf16.mxu0 %v2357_v48 }
 0x58c   :  { %2104 = vmatpush3.bf16.msra.mxu1 %v2358_v49  ;;  %2126 = vmatpush3.bf16.msra.mxu0 %v2359_v50  ;;  %v1579_v50 = vld [vmem:[#allocation11 + $0x20] ss:$0 sm:$0xff] }
 0x58d   :  { %2105 = vmatprep.subr.bf16.mxu1 %v2360_v51  ;;  %2127 = vmatprep.subr.bf16.mxu0 %v2361_v52 }
 0x590   :  { %2106 = vmatpush3.bf16.msra.mxu1 %v2362_v53  ;;  %2128 = vmatpush3.bf16.msra.mxu0 %v2363_v54 }
 0x591   :  { %2107 = vmatprep.subr.bf16.mxu1 %v2364_v55  ;;  %2129 = vmatprep.subr.bf16.mxu0 %v2365_v56 }
 0x594   :  { %2108 = vmatpush3.bf16.msra.mxu1 %v2366_v57  ;;  %2130 = vmatpush3.bf16.msra.mxu0 %v2367_v58 }
 0x595   :  { %2109 = vmatprep.subr.bf16.mxu1 %v2368_v59  ;;  %2131 = vmatprep.subr.bf16.mxu0 %v2369_v60 }
 0x598   :  { %2110 = vmatpush3.bf16.msra.mxu1 %v2370_v61  ;;  %2132 = vmatpush3.bf16.msra.mxu0 %v2371_v62 }
 0x599   :  { %2111 = vmatprep.subr.bf16.mxu1 %v2372_v63  ;;  %2133 = vmatprep.subr.bf16.mxu0 %v2373_v4 }
 0x59c   :  { %2112 = vmatpush3.bf16.msra.mxu1 %v2374_v1  ;;  %2134 = vmatpush3.bf16.msra.mxu0 %v2375_v2 }
 0x59d   :  { %2113 = vmatprep.subr.bf16.mxu1 %v2376_v3  ;;  %2135 = vmatprep.subr.bf16.mxu0 %v2377_v5 }
 0x5a0   :  { %2114 = vmatpush3.bf16.msra.mxu1 %v2378_v9  ;;  %2136 = vmatpush3.bf16.msra.mxu0 %v2379_v12 }
 0x5a1   :  { %2115 = vmatprep.subr.bf16.mxu1 %v2380_v13  ;;  %2137 = vmatprep.subr.bf16.mxu0 %v2381_v14 }
 0x5a4   :  { %2116 = vmatpush3.bf16.msra.mxu1 %v2382_v15  ;;  %2138 = vmatpush3.bf16.msra.mxu0 %v2383_v16 }
 0x647   :  { %v1443_v0 = vpop.f32.mrf.mxu1  ;;  %v1484_v20 = vpop.f32.mrf.mxu0 }
 0x648   :  { %v1444_v23 = vadd.f32 %v1443_v0, %v1232_v18  ;;  %v1485_v24 = vadd.f32 %v1484_v20, %v1240_v19 }
 0x649   :  { %v1445_v25 = vpop.f32.mrf.mxu1  ;;  %v1486_v26 = vpop.f32.mrf.mxu0 }
 0x64a   :  { %v1495_v27 = vmul.f32 1.442695, %v1444_v23  ;;  %v1499_v28 = vmul.f32 1.442695, %v1485_v24  ;;  %v1446_v29 = vadd.f32 %v1445_v25, %v1236_v21  ;;  %v1487_v30 = vadd.f32 %v1486_v26, %v1244_v22 }
 0x64b   :  { %v1447_v7 = vpop.f32.mrf.mxu1  ;;  %v1488_v31 = vpop.f32.mrf.mxu0  ;;  %vm1491_vm12 = vcmp.gt.f32.partialorder %v1444_v23, 0.0  ;;  %vm1493_vm13 = vcmp.gt.f32.partialorder %v1485_v24, 0.0 }
 0x64c   :  { %2402 = vpow2.f32 %v1495_v27  ;;  %v1497_v8 = vmul.f32 1.442695, %v1446_v29  ;;  %v1501_v34 = vmul.f32 1.442695, %v1487_v30  ;;  %vm1492_vm14 = vcmp.gt.f32.partialorder %v1446_v29, 0.0 }
 0x64d   :  { %2404 = vpow2.f32 %v1499_v28  ;;  %v1448_v32 = vpop.f32.mrf.mxu1  ;;  %v1489_v33 = vpop.f32.mrf.mxu0  ;;  %vm1494_vm15 = vcmp.gt.f32.partialorder %v1487_v30, 0.0 }
 0x64e   :  { %2406 = vpow2.f32 %v1497_v8 }
 0x64f   :  { %2408 = vpow2.f32 %v1501_v34 }
 0x659   :  { %v2403_v6 = vpop.eup %2402 }
 0x65a   :  { %v2405_v10 = vpop.eup %2404  ;;  %v1992_v11 = vadd.f32 -1.0, %v2403_v6 }
 0x65b   :  { %v1994_v35 = vadd.f32 -1.0, %v2405_v10  ;;  %v2407_v36 = vpop.eup %2406 }
 0x65c   :  { %v2409_v37 = vpop.eup %2408  ;;  %v1993_v38 = vadd.f32 -1.0, %v2407_v36  ;;  %v1507_v39 = vsel %vm1491_vm12, %v1444_v23, %v1992_v11 }
 0x65d   :  { %v1995_v40 = vadd.f32 -1.0, %v2409_v37  ;;  %v1509_v41 = vsel %vm1493_vm13, %v1485_v24, %v1994_v35  ;;  %v1511_v45 = vpack.c.bf16 %v1507_v39, %v1507_v39 }
 0x65e   :  { %v1508_v42 = vsel %vm1492_vm14, %v1446_v29, %v1993_v38  ;;  %v1513_v47 = vpack.c.bf16 %v1509_v41, %v1509_v41 }
 0x65f   :  { %v1512_v43 = vpack.c.bf16 %v1508_v42, %v1508_v42  ;;  %v1510_v44 = vsel %vm1494_vm15, %v1487_v30, %v1995_v40 }
 0x660   :  { %v1514_v46 = vpack.c.bf16 %v1510_v44, %v1510_v44 }
 0x661   :  { %1804 = vmatprep.mubr.bf16.mxu1 %v1512_v43 }
 0x662   :  { %1844 = vmatprep.mubr.bf16.mxu0 %v1514_v46  ;;  %1805 = vmatmul.mubr.bf16.vlgmr.msra.gmra.mxu1 %v1511_v45 }
 0x663   :  { %1845 = vmatmul.mubr.bf16.vlgmr.msra.gmra.mxu0 %v1513_v47 }
 0x722   :  { %v2117_v48 = vpop.f32.mrf.mxu1 }
 0x723   :  { %v2139_v49 = vpop.f32.mrf.mxu0 }
 0x724   :  { %v2118_v51 = vpop.f32.mrf.mxu1 }
 0x725   :  { %v2119_v52 = vadd.f32 %v2118_v51, %v2117_v48  ;;  %v2140_v53 = vpop.f32.mrf.mxu0 }
 0x726   :  { %v2120_v54 = vpop.f32.mrf.mxu1  ;;  %v2141_v56 = vadd.f32 %v2140_v53, %v2139_v49 }
 0x727   :  { %v1807_v55 = vadd.f32 %v2119_v52, %v1579_v50  ;;  %v2142_v57 = vpop.f32.mrf.mxu0 }
 0x728   :  { %v2121_v58 = vpop.f32.mrf.mxu1 }
 0x729   :  { %v1847_v59 = vadd.f32 %v2141_v56, %v1807_v55  ;;  %v2143_v60 = vpop.f32.mrf.mxu0 }
 0x72b   :  { %v1852_v61 = vsub.f32 0.0, %v1847_v59 }
 0x72d   :  { %v1853_v62 = vmul.f32 1.442695, %v1852_v61 }
 0x72f   :  { %2410 = vpow2.f32 %v1853_v62 }
 0x73c   :  { %v2411_v63 = vpop.eup %2410 }
 0x73d   :  { %v1855_v4 = vadd.f32 1.0, %v2411_v63 }
 0x73f   :  { %2412 = vrcp.f32 %v1855_v4 }
 0x74c   :  { %v2413_v1 = vpop.eup %2412 }
 0x74d   :  { %1857 = vst [vmem:[#allocation13] sm:$0xff] %v2413_v1 }
 0x74e   :  { %2545 = shalt.err (!%p2542_p6)
}
 0x74f   :  { %1870 = dma.vmem_to_hbm [thread:$0]  %s1868_s9, 128, %s2738_s8, [#allocation4]  }
 0x750   :  { %2562 = dma.done.wait [#allocation4], 128  }
 0x751   :  { %2563 = vsyncadd [#allocation4], 4294967168 }
 0x752   :  { %1878 = vsyncpa [#allocation3], 1 }
 0x753   :  { %1879 = vsyncpa [#allocation6], 1 }
 0x754   :  { %1880 = vsyncpa [#allocation9], 1 }
 0x755   :  { %1881 = vsyncpa [#allocation12], 1 }
 0x756   :  { %1882 = vsyncpa [#allocation4], 1 }

</bundles_post_ra>
